<compile_context>
chip_gen: v6e
topology: v6e:2x2x1
jax: 0.10.0
libtpu: 0.0.40
codegen_flags: <defaults>
</compile_context>

<pallas_src>
import jax
import jax.numpy as jnp
from jax import lax
from jax.experimental import pallas as pl
from jax.experimental.pallas import tpu as pltpu


# ---------------------------------------------------------------------------
# Hardware queries (best effort, safe fallbacks).
# ---------------------------------------------------------------------------

def _vmem_physical_bytes():
    try:
        info = pltpu.get_tpu_info()
        return int(getattr(info, "vmem_capacity_bytes", 64 << 20))
    except Exception:
        return 64 << 20  # conservative (v7x-sized) if the query is unavailable


def _vmem_limit_bytes(vmem_physical):
    # 64 MiB scoped limit on 128-MiB parts (v5e/v6e); 48 MiB on 64-MiB parts (v7x).
    return (64 << 20) if vmem_physical >= (96 << 20) else (48 << 20)


def _target_block_bytes(vmem_physical):
    # ~4 MiB input blocks on v5e/v6e, ~2 MiB on v7x (>=85% of measured HBM roofline).
    return (4 << 20) if vmem_physical >= (96 << 20) else (2 << 20)


def _has_bf16_valu():
    # v6e / v7x have a bf16-capable VPU; v5e and older do not.
    try:
        kind = jax.devices()[0].device_kind.lower()
    except Exception:
        return False
    return not any(s in kind for s in ("v2", "v3", "v4", "v5"))


_ROLL_LIKE_JNP = None


def _roll_matches_jnp():
    """One-time probe: does pltpu.roll follow jnp.roll's shift direction?

    The interior of each separable pass is direction-agnostic (it sums both shifts);
    only the reflect boundary selects care, so pin the convention once at runtime.
    """
    global _ROLL_LIKE_JNP
    if _ROLL_LIKE_JNP is None:
        def probe(x_ref, o_ref):
            o_ref[...] = pltpu.roll(x_ref[...], 1, axis=1)

        try:
            x = lax.broadcasted_iota(jnp.int32, (8, 128), 1)
            y = pl.pallas_call(
                probe, out_shape=jax.ShapeDtypeStruct((8, 128), jnp.int32))(x)
            if bool(jnp.array_equal(y, jnp.roll(x, 1, axis=1))):
                _ROLL_LIKE_JNP = True
            elif bool(jnp.array_equal(y, jnp.roll(x, -1, axis=1))):
                _ROLL_LIKE_JNP = False
            else:
                _ROLL_LIKE_JNP = True
        except Exception:
            _ROLL_LIKE_JNP = True
    return _ROLL_LIKE_JNP


# ---------------------------------------------------------------------------
# Kernels.
# ---------------------------------------------------------------------------

def _make_flat_kernel(H, W, compute_dtype, roll_like_jnp):
    """Blur of blocks shaped (tc, H*W).

    Each sublane row of the block is one full image plane flattened along the lane
    axis, so I/O is lane-dense even for small W.  Rolls act per sublane row, hence
    they never mix planes; the circular wrap at the row ends is overwritten by the
    reflect fix-ups below.
    """
    n = H * W

    def kernel(x_ref, o_ref):
        x = x_ref[...].astype(compute_dtype)                       # (tc, n)
        j = lax.broadcasted_iota(jnp.int32, (1, n), 1)
        # --- vertical [1,2,1]: neighbours at +-W in the flat index, reflect rows ---
        a = pltpu.roll(x, W, axis=1)
        b = pltpu.roll(x, n - W, axis=1)
        up, dn = (a, b) if roll_like_jnp else (b, a)               # x[j-W], x[j+W]
        up = jnp.where(j < W, dn, up)                              # row -1 -> row 1
        dn = jnp.where(j >= n - W, up, dn)                         # row H  -> row H-2
        v = (up + dn) + (x + x)
        # --- horizontal [1,2,1]: neighbours at +-1, reflect columns ---
        a = pltpu.roll(v, 1, axis=1)
        b = pltpu.roll(v, n - 1, axis=1)
        lt, rt = (a, b) if roll_like_jnp else (b, a)               # v[j-1], v[j+1]
        if (W & (W - 1)) == 0:                                     # W power of two
            col = jnp.bitwise_and(j, W - 1)
        else:
            col = j % W
        lt = jnp.where(col == 0, rt, lt)                           # col -1 -> col 1
        rt = jnp.where(col == W - 1, lt, rt)                       # col W  -> col W-2
        out = ((lt + rt) + (v + v)) * 0.0625
        o_ref[...] = out.astype(o_ref.dtype)

    return kernel


def _make_plane_kernel(H, W, compute_dtype, roll_like_jnp):
    """Blur of blocks shaped (tc, H, W) (used when W is already a multiple of 128,
    or when a flattened plane group would not fit the VMEM budget)."""

    def kernel(x_ref, o_ref):
        x = x_ref[...].astype(compute_dtype)                       # (tc, H, W)
        # --- vertical [1,2,1] along sublanes, reflect at rows 0 / H-1 ---
        a = pltpu.roll(x, 1, axis=1)
        b = pltpu.roll(x, H - 1, axis=1)
        up, dn = (a, b) if roll_like_jnp else (b, a)               # x[h-1], x[h+1]
        h = lax.broadcasted_iota(jnp.int32, (1, H, W), 1)
        up = jnp.where(h == 0, dn, up)
        dn = jnp.where(h == H - 1, up, dn)
        v = (up + dn) + (x + x)
        # --- horizontal [1,2,1] along lanes, reflect at columns 0 / W-1 ---
        a = pltpu.roll(v, 1, axis=2)
        b = pltpu.roll(v, W - 1, axis=2)
        lt, rt = (a, b) if roll_like_jnp else (b, a)               # v[w-1], v[w+1]
        w = lax.broadcasted_iota(jnp.int32, (1, H, W), 2)
        lt = jnp.where(w == 0, rt, lt)
        rt = jnp.where(w == W - 1, lt, rt)
        out = ((lt + rt) + (v + v)) * 0.0625
        o_ref[...] = out.astype(o_ref.dtype)

    return kernel


# ---------------------------------------------------------------------------
# Block-size selection.
# ---------------------------------------------------------------------------

def _prefer_even_steps(nc, tc, granule):
    """Prefer an even number of grid steps (v7x: 2 TensorCores share the 'parallel'
    axis) when achievable without shrinking the block below ~half its size."""
    def steps(t):
        return -(-nc // t)

    if steps(tc) % 2 == 0:
        return tc
    t = tc - granule
    lo = max(granule, tc // 2)
    while t >= lo:
        if steps(t) % 2 == 0:
            return t
        t -= granule
    return tc


def _pick_planes_flat(nc, plane_io_bytes, plane_total_bytes, vmem_physical, vmem_limit):
    # 2-D (NC, H*W) layout: the plane count sits in the second-minor block dim, so it
    # must be a multiple of 8 or cover all of NC.
    if nc <= 8:
        return nc
    cap = min(_target_block_bytes(vmem_physical) // max(plane_io_bytes, 1),
              (vmem_limit // 2) // max(plane_total_bytes, 1))
    cap = min(max(cap, 8), nc)
    tc = max(8, (cap // 8) * 8)
    return _prefer_even_steps(nc, tc, 8)


def _pick_planes_3d(nc, plane_io_bytes, plane_total_bytes, vmem_physical, vmem_limit):
    cap = min(_target_block_bytes(vmem_physical) // max(plane_io_bytes, 1),
              (vmem_limit // 2) // max(plane_total_bytes, 1))
    tc = int(max(1, min(cap, nc)))
    # TODO(synk): when even tc == 1 exceeds the budget, add an H-tiling grid axis with
    # a 1-row halo per side instead of whole-plane blocks (very large planes on v7x).
    return _prefer_even_steps(nc, tc, 1)


# ---------------------------------------------------------------------------
# Public entry point.
# ---------------------------------------------------------------------------

def blur(x, *, allow_bf16_compute=True):
    """x: (N, C, H, W) -> (N, C, H, W); depthwise [1,2,1]^T[1,2,1]/16 blur with
    'reflect' padding (matches kornia.filter2d used by lucidrains' Blur)."""
    N, C, H, W = x.shape
    assert H >= 2 and W >= 2, "reflect padding requires H, W >= 2"
    NC = N * C

    io_dtype = x.dtype
    compute_dtype = jnp.float32
    if allow_bf16_compute and io_dtype == jnp.bfloat16 and _has_bf16_valu():
        compute_dtype = jnp.bfloat16

    roll_like_jnp = _roll_matches_jnp()
    vmem_physical = _vmem_physical_bytes()
    vmem_limit = _vmem_limit_bytes(vmem_physical)

    n = H * W
    plane_io = n * jnp.dtype(io_dtype).itemsize
    plane_cmp = n * jnp.dtype(compute_dtype).itemsize
    # in + out, double buffered (I/O dtype) + ~6 full-block temporaries (compute dtype)
    plane_total = 4 * plane_io + 6 * plane_cmp

    use_flat = (W % 128 != 0) and (min(NC, 8) * plane_total <= vmem_limit // 2)

    if use_flat:
        xk = x.reshape(NC, n)          # free reshape; minor dim is lane-dense H*W
        tc = _pick_planes_flat(NC, plane_io, plane_total, vmem_physical, vmem_limit)
        kernel = _make_flat_kernel(H, W, compute_dtype, roll_like_jnp)
        block = (tc, n)
        index_map = lambda i: (i, 0)
    else:
        xk = x.reshape(NC, H, W)
        tc = _pick_planes_3d(NC, plane_io, plane_total, vmem_physical, vmem_limit)
        kernel = _make_plane_kernel(H, W, compute_dtype, roll_like_jnp)
        block = (tc, H, W)
        index_map = lambda i: (i, 0, 0)

    grid = (pl.cdiv(NC, tc),)          # ragged last block is fine: planes independent

    out = pl.pallas_call(
        kernel,
        out_shape=jax.ShapeDtypeStruct(xk.shape, io_dtype),
        grid_spec=pltpu.PrefetchScalarGridSpec(
            num_scalar_prefetch=0,
            grid=grid,
            in_specs=[pl.BlockSpec(block, index_map)],
            out_specs=pl.BlockSpec(block, index_map),
        ),
        compiler_params=pltpu.CompilerParams(
            dimension_semantics=("parallel",),
            vmem_limit_bytes=vmem_limit,
        ),
    )(xk)
    return out.reshape(N, C, H, W)


# ---------------------------------------------------------------------------
# Pure-JAX reference and self-test.
# ---------------------------------------------------------------------------

def _blur_reference(x):
    """Depthwise conv with the same kernel + reflect padding."""
    N, C, H, W = x.shape
    f = jnp.array([1.0, 2.0, 1.0], dtype=jnp.float32)
    k = f[None, :] * f[:, None]
    k = k / jnp.sum(k)  # normalized=True
    weight = jnp.broadcast_to(k, (C, 1, 3, 3))  # OIHW, depthwise (I=1, groups=C)
    xp = jnp.pad(x.astype(jnp.float32), ((0, 0), (0, 0), (1, 1), (1, 1)), mode="reflect")
    y = jax.lax.conv_general_dilated(
        xp, weight,
        window_strides=(1, 1),
        padding="VALID",
        dimension_numbers=("NCHW", "OIHW", "NCHW"),
        feature_group_count=C,
    )
    return y.astype(x.dtype)


if __name__ == "__main__":
    key = jax.random.PRNGKey(0)
    k1, k2, k3, k4 = jax.random.split(key, 4)

    # Main check: small StyleGAN-ish shape, f32, small W -> flat lane-dense path.
    x = jax.random.normal(k1, (2, 4, 16, 16), dtype=jnp.float32)
    y = blur(x)
    jax.block_until_ready(y)
    assert y.shape == x.shape
    assert jnp.allclose(y, _blur_reference(x), atol=1e-5, rtol=1e-5), \
        "Pallas blur mismatch vs reference (flat path)"

    # W a multiple of 128 -> per-plane (tc, H, W) path.
    x2 = jax.random.normal(k2, (1, 2, 8, 128), dtype=jnp.float32)
    y2 = blur(x2)
    assert jnp.allclose(y2, _blur_reference(x2), atol=1e-5, rtol=1e-5), \
        "Pallas blur mismatch vs reference (plane path)"

    # N*C not a multiple of the block granularity -> ragged pl.cdiv grid.
    x3 = jax.random.normal(k3, (1, 13, 16, 16), dtype=jnp.float32)
    y3 = blur(x3)
    assert jnp.allclose(y3, _blur_reference(x3), atol=1e-5, rtol=1e-5), \
        "Pallas blur mismatch vs reference (ragged grid)"

    # bf16 I/O (uses bf16 in-kernel arithmetic on chips with a bf16 VPU).
    xb = jax.random.normal(k4, (2, 4, 16, 16), dtype=jnp.bfloat16)
    yb = blur(xb)
    assert jnp.allclose(yb.astype(jnp.float32),
                        _blur_reference(xb).astype(jnp.float32),
                        atol=0.08, rtol=0.08), \
        "Pallas blur mismatch vs reference (bf16)"

    print("KERNEL_OK")
</pallas_src>

<mosaic_0001>
module attributes {stable_mosaic.version = 11 : i64} {
  func.func @probe(%arg0: memref<8x128xi32, #tpu.memory_space<vmem>>, %arg1: memref<8x128xi32, #tpu.memory_space<vmem>>) attributes {dimension_semantics = [], scalar_prefetch = 0 : i64, scratch_operands = 0 : i64, tpu.core_type = #tpu.core_type<tc>} {
    %c0 = arith.constant 0 : index
    %c0_0 = arith.constant 0 : index
    %0 = vector.load %arg0[%c0, %c0_0] : memref<8x128xi32, #tpu.memory_space<vmem>>, vector<8x128xi32>
    %c1_i32 = arith.constant 1 : i32
    %1 = tpu.dynamic_rotate %0 by %c1_i32 dim 1 : vector<8x128xi32>, i32 -> vector<8x128xi32>
    %c0_1 = arith.constant 0 : index
    %c0_2 = arith.constant 0 : index
    %2 = vector.load %arg1[%c0_1, %c0_2] : memref<8x128xi32, #tpu.memory_space<vmem>>, vector<8x128xi32>
    tpu.vector_store %arg1[%c0_1, %c0_2], %1 {strides = array<i32>} : memref<8x128xi32, #tpu.memory_space<vmem>>, vector<8x128xi32>,
    return
  }
}

module attributes {stable_mosaic.version = 11 : i64} {
  func.func @kernel(%arg0: i32, %arg1: memref<8x256xf32, #tpu.memory_space<vmem>>, %arg2: memref<8x256xf32, #tpu.memory_space<vmem>>) attributes {dimension_semantics = [#tpu.dimension_semantics<parallel>], iteration_bounds = array<i64: 1>, scalar_prefetch = 0 : i64, scratch_operands = 0 : i64, tpu.core_type = #tpu.core_type<tc>, window_params = [{transform_indices = @transform_0, window_bounds = array<i64: 8, 256>}, {transform_indices = @transform_1, window_bounds = array<i64: 8, 256>}]} {
    %c0 = arith.constant 0 : index
    %c0_0 = arith.constant 0 : index
    %0 = vector.load %arg1[%c0, %c0_0] : memref<8x256xf32, #tpu.memory_space<vmem>>, vector<8x256xf32>
    %1 = tpu.iota {dimensions = array<i32: 1>} : vector<1x256xi32>
    %c16_i32 = arith.constant 16 : i32
    %2 = tpu.dynamic_rotate %0 by %c16_i32 dim 1 : vector<8x256xf32>, i32 -> vector<8x256xf32>
    %c240_i32 = arith.constant 240 : i32
    %3 = tpu.dynamic_rotate %0 by %c240_i32 dim 1 : vector<8x256xf32>, i32 -> vector<8x256xf32>
    %c16_i32_1 = arith.constant 16 : i32
    %4 = vector.broadcast %c16_i32_1 : i32 to vector<1x256xi32>
    %5 = arith.cmpi slt, %1, %4 : vector<1x256xi32>
    %6 = vector.shape_cast %5 : vector<1x256xi1> to vector<1x256xi1>
    %7 = vector.broadcast %6 : vector<1x256xi1> to vector<8x256xi1>
    %8 = arith.select %7, %3, %2 : vector<8x256xi1>, vector<8x256xf32>
    %c240_i32_2 = arith.constant 240 : i32
    %9 = vector.broadcast %c240_i32_2 : i32 to vector<1x256xi32>
    %10 = arith.cmpi sge, %1, %9 : vector<1x256xi32>
    %11 = vector.shape_cast %10 : vector<1x256xi1> to vector<1x256xi1>
    %12 = vector.broadcast %11 : vector<1x256xi1> to vector<8x256xi1>
    %13 = arith.select %12, %8, %3 : vector<8x256xi1>, vector<8x256xf32>
    %14 = arith.addf %8, %13 : vector<8x256xf32>
    %15 = arith.addf %0, %0 : vector<8x256xf32>
    %16 = arith.addf %14, %15 : vector<8x256xf32>
    %c1_i32 = arith.constant 1 : i32
    %17 = tpu.dynamic_rotate %16 by %c1_i32 dim 1 : vector<8x256xf32>, i32 -> vector<8x256xf32>
    %c255_i32 = arith.constant 255 : i32
    %18 = tpu.dynamic_rotate %16 by %c255_i32 dim 1 : vector<8x256xf32>, i32 -> vector<8x256xf32>
    %c15_i32 = arith.constant 15 : i32
    %19 = vector.broadcast %c15_i32 : i32 to vector<1x256xi32>
    %20 = arith.andi %1, %19 : vector<1x256xi32>
    %c0_i32 = arith.constant 0 : i32
    %21 = vector.broadcast %c0_i32 : i32 to vector<1x256xi32>
    %22 = arith.cmpi eq, %20, %21 : vector<1x256xi32>
    %23 = vector.shape_cast %22 : vector<1x256xi1> to vector<1x256xi1>
    %24 = vector.broadcast %23 : vector<1x256xi1> to vector<8x256xi1>
    %25 = arith.select %24, %18, %17 : vector<8x256xi1>, vector<8x256xf32>
    %c15_i32_3 = arith.constant 15 : i32
    %26 = vector.broadcast %c15_i32_3 : i32 to vector<1x256xi32>
    %27 = arith.cmpi eq, %20, %26 : vector<1x256xi32>
    %28 = vector.shape_cast %27 : vector<1x256xi1> to vector<1x256xi1>
    %29 = vector.broadcast %28 : vector<1x256xi1> to vector<8x256xi1>
    %30 = arith.select %29, %25, %18 : vector<8x256xi1>, vector<8x256xf32>
    %31 = arith.addf %25, %30 : vector<8x256xf32>
    %32 = arith.addf %16, %16 : vector<8x256xf32>
    %33 = arith.addf %31, %32 : vector<8x256xf32>
    %cst = arith.constant 6.250000e-02 : f32
    %34 = vector.broadcast %cst : f32 to vector<8x256xf32>
    %35 = arith.mulf %33, %34 : vector<8x256xf32>
    %c0_4 = arith.constant 0 : index
    %c0_5 = arith.constant 0 : index
    %36 = vector.load %arg2[%c0_4, %c0_5] : memref<8x256xf32, #tpu.memory_space<vmem>>, vector<8x256xf32>
    tpu.vector_store %arg2[%c0_4, %c0_5], %35 {strides = array<i32>} : memref<8x256xf32, #tpu.memory_space<vmem>>, vector<8x256xf32>,
    return
  }
  func.func @transform_0(%arg0: i32) -> (i32, i32) {
    %c0_i32 = arith.constant 0 : i32
    %c0_i32_0 = arith.constant 0 : i32
    return %arg0, %c0_i32 : i32, i32
  }
  func.func @transform_1(%arg0: i32) -> (i32, i32) {
    %c0_i32 = arith.constant 0 : i32
    %c0_i32_0 = arith.constant 0 : i32
    return %arg0, %c0_i32 : i32, i32
  }
}

</mosaic_0001>

<bundles_post_ra>
// kernel: tpu_custom_call.1
= control target key start
LH: loop header
LB: loop body
LE: loop exit
PB: predicated region body
PF: predicated region fallthrough
CT: control target
= control target key end

     0   :  { %6 = vsyncpa [#allocation3], 0  ;;  %s106_s0 = inlined_call_operand.hbm [shape: s32[8,128], index: 0, kind: input, shape index: {}]   ;;  %s107_s1 = inlined_call_operand.hbm [shape: s32[8,128], index: 1, kind: output, shape index: {}]  }
   0x1   :  { %7 = vsyncpa [#allocation4], 0  ;;  %s87_s6 = smov [#allocation2]  }
   0x2   :  { %s14_s7 = sshll.u32 %s87_s6, 4  ;;  %s15_s7 = int_to_ptr.vmem [resolvable:$true] %s14_s7 }
   0x3   :  { %s51_s8 = scalar_lea.vmem %s15_s7, 128  ;;  %p56_p1 = scmp.lt.s32.totalorder %s15_s7, %s15_s7 }
   0x4   :  { %p52_p0 = scmp.ne.s32.totalorder %s15_s7, %s51_s8  ;;  %p57_p2 = scmp.lt.s32.totalorder %s51_s8, %s51_s8 }
   0x6   :  { %p58_p3 = por %p57_p2, %p56_p1 }
   0x8   :  { %p59_p4 = pnand %p58_p3, %p52_p0 }
   0xa   :  { %62 = shalt.err (!%p59_p4)
}
   0xb   :  { %17 = dma.hbm_to_vmem [thread:$0]  %s106_s0, 128, %s15_s7, [#allocation3]  }
   0xc   :  { %83 = dma.done.wait [#allocation3], 128  }
   0xd   :  { %84 = vsyncadd [#allocation3], 4294967168  ;;  %v21_v0 = vld [vmem:[#allocation2] sm:$0xff]  ;;  %s88_s11 = smov 1   ;;  %s89_s12 = smov [#allocation5]  }
   0xe   :  { %22 = vrot.lane.b32.xlu0 %v21_v0, %s88_s11  ;;  %s31_s13 = sshll.u32 %s89_s12, 4  ;;  %s32_s13 = int_to_ptr.vmem [resolvable:$true] %s31_s13 }
   0xf   :  { %s63_s14 = scalar_lea.vmem %s32_s13, 128  ;;  %p68_p6 = scmp.lt.s32.totalorder %s32_s13, %s32_s13 }
  0x10   :  { %p64_p5 = scmp.ne.s32.totalorder %s32_s13, %s63_s14  ;;  %p69_p7 = scmp.lt.s32.totalorder %s63_s14, %s63_s14 }
  0x12   :  { %p70_p8 = por %p69_p7, %p68_p6 }
  0x14   :  { %p71_p9 = pnand %p70_p8, %p64_p5 }
  0x80   :  { %v23_v1 = vpop.permute.xlu0 %22 }
  0x81   :  { %24 = vst [vmem:[#allocation5] sm:$0xff] %v23_v1 }
  0x82   :  { %74 = shalt.err (!%p71_p9)
}
  0x83   :  { %34 = dma.vmem_to_hbm [thread:$0]  %s32_s13, 128, %s107_s1, [#allocation4]  }
  0x84   :  { %85 = dma.done.wait [#allocation4], 128  }
  0x85   :  { %86 = vsyncadd [#allocation4], 4294967168 }
  0x86   :  { %38 = vsyncpa [#allocation3], 1 }
  0x87   :  { %39 = vsyncpa [#allocation4], 1 }

// kernel: tpu_custom_call.1
= control target key start
LH: loop header
LB: loop body
LE: loop exit
PB: predicated region body
PF: predicated region fallthrough
CT: control target
= control target key end

     0   :  { %6 = vsyncpa [#allocation3], 0  ;;  %s190_s0 = inlined_call_operand.hbm [shape: f32[8,256], index: 0, kind: input, shape index: {}]   ;;  %s191_s1 = inlined_call_operand.hbm [shape: f32[8,256], index: 1, kind: output, shape index: {}]  }
   0x1   :  { %7 = vsyncpa [#allocation4], 0  ;;  %s168_s6 = smov [#allocation2]  }
   0x2   :  { %s14_s7 = sshll.u32 %s168_s6, 4  ;;  %s15_s7 = int_to_ptr.vmem [resolvable:$true] %s14_s7 }
   0x3   :  { %s132_s8 = scalar_lea.vmem %s15_s7, 256  ;;  %p137_p1 = scmp.lt.s32.totalorder %s15_s7, %s15_s7 }
   0x4   :  { %p133_p0 = scmp.ne.s32.totalorder %s15_s7, %s132_s8  ;;  %p138_p2 = scmp.lt.s32.totalorder %s132_s8, %s132_s8 }
   0x6   :  { %p139_p3 = por %p138_p2, %p137_p1 }
   0x8   :  { %p140_p4 = pnand %p139_p3, %p133_p0 }
   0xa   :  { %143 = shalt.err (!%p140_p4)
}
   0xb   :  { %17 = dma.hbm_to_vmem [thread:$0]  %s190_s0, 256, %s15_s7, [#allocation3]  }
   0xc   :  { %164 = dma.done.wait [#allocation3], 256  }
   0xd   :  { %165 = vsyncadd [#allocation3], 4294967040  ;;  %v21_v0 = vld [vmem:[#allocation2] sm:$0xff]  ;;  %s169_s11 = smov 112   ;;  %s170_s12 = smov 16   ;;  %v22_v1 = vld [vmem:[#allocation2 + $0x8] sm:$0xff]  ;;  %v23_v2 = vlaneseq }
   0xe   :  { %33 = vrot.lane.b32.xlu1 %v21_v0, %s169_s11  ;;  %26 = vrot.lane.b32.xlu0 %v21_v0, %s170_s12  ;;  %v57_v7 = vadd.f32 %v21_v0, %v21_v0  ;;  %v58_v8 = vadd.f32 %v22_v1, %v22_v1  ;;  %s171_s0 = smov 1   ;;  %s172_s13 = smov 127  }
   0xf   :  { %v24_v3 = vand.u32 127, %v23_v2  ;;  %s173_s14 = smov [#allocation5]  }
  0x10   :  { %s109_s15 = sshll.u32 %s173_s14, 4  ;;  %s110_s15 = int_to_ptr.vmem [resolvable:$true] %s109_s15 }
  0x11   :  { %v25_v4 = vadd.s32 128, %v24_v3  ;;  %vm37_vm0 = vcmp.lt.s32.totalorder %v24_v3, 112  ;;  %vm30_vm1 = vcmp.lt.s32.totalorder %v24_v3, 16  ;;  %v75_v21 = vand.u32 15, %v24_v3  ;;  %s144_s16 = scalar_lea.vmem %s110_s15, 256  ;;  %p149_p6 = scmp.lt.s32.totalorder %s110_s15, %s110_s15 }
  0x12   :  { %35 = vrot.lane.b32.xlu1 %v22_v1, %s169_s11  ;;  %28 = vrot.lane.b32.xlu0 %v22_v1, %s170_s12  ;;  %vm65_vm3 = vcmp.lt.s32.totalorder %v24_v3, 1  ;;  %vm72_vm4 = vcmp.lt.s32.totalorder %v24_v3, 127  ;;  %p145_p5 = scmp.ne.s32.totalorder %s110_s15, %s144_s16  ;;  %p150_p7 = scmp.lt.s32.totalorder %s144_s16, %s144_s16 }
  0x13   :  { %vm48_vm2 = vcmp.ge.s32.totalorder %v25_v4, 240  ;;  %v76_v22 = vand.u32 15, %v25_v4  ;;  %vm77_vm5 = vcmp.eq.s32.totalorder %v75_v21, 0  ;;  %vm85_vm7 = vcmp.eq.s32.totalorder %v75_v21, 15 }
  0x14   :  { %p151_p8 = por %p150_p7, %p149_p6 }
  0x15   :  { %vm78_vm6 = vcmp.eq.s32.totalorder %v76_v22, 0  ;;  %vm86_vm8 = vcmp.eq.s32.totalorder %v76_v22, 15 }
  0x16   :  { %p152_p9 = pnand %p151_p8, %p145_p5 }
  0x80   :  { %v34_v5 = vpop.permute.xlu1 %33  ;;  %v27_v6 = vpop.permute.xlu0 %26 }
  0x84   :  { %v36_v9 = vpop.permute.xlu1 %35  ;;  %v29_v10 = vpop.permute.xlu0 %28 }
  0x85   :  { %v38_v11 = vsel %vm37_vm0, %v34_v5, %v36_v9  ;;  %v39_v12 = vsel %vm37_vm0, %v36_v9, %v34_v5  ;;  %v31_v13 = vsel %vm30_vm1, %v27_v6, %v29_v10  ;;  %v32_v14 = vsel %vm30_vm1, %v29_v10, %v27_v6 }
  0x86   :  { %v45_v15 = vsel %vm30_vm1, %v38_v11, %v32_v14  ;;  %v54_v16 = vsel %vm48_vm2, %v31_v13, %v39_v12 }
  0x87   :  { %v55_v17 = vadd.f32 %v45_v15, %v38_v11  ;;  %v56_v18 = vadd.f32 %v54_v16, %v31_v13 }
  0x89   :  { %v60_v19 = vadd.f32 %v58_v8, %v56_v18  ;;  %v59_v20 = vadd.f32 %v57_v7, %v55_v17 }
  0x8b   :  { %63 = vrot.lane.b32.xlu1 %v60_v19, %s171_s0  ;;  %61 = vrot.lane.b32.xlu0 %v59_v20, %s171_s0  ;;  %v95_v37 = vadd.f32 %v59_v20, %v59_v20  ;;  %v96_v38 = vadd.f32 %v60_v19, %v60_v19 }
  0x8f   :  { %70 = vrot.lane.b32.xlu1 %v60_v19, %s172_s13  ;;  %68 = vrot.lane.b32.xlu0 %v59_v20, %s172_s13 }
  0xfd   :  { %v64_v23 = vpop.permute.xlu1 %63  ;;  %v62_v24 = vpop.permute.xlu0 %61 }
  0xfe   :  { %v66_v27 = vsel %vm65_vm3, %v62_v24, %v64_v23  ;;  %v67_v28 = vsel %vm65_vm3, %v64_v23, %v62_v24 }
 0x101   :  { %v71_v25 = vpop.permute.xlu1 %70  ;;  %v69_v26 = vpop.permute.xlu0 %68 }
 0x102   :  { %v73_v29 = vsel %vm72_vm4, %v69_v26, %v71_v25  ;;  %v74_v30 = vsel %vm72_vm4, %v71_v25, %v69_v26 }
 0x103   :  { %v83_v31 = vsel %vm77_vm5, %v73_v29, %v67_v28  ;;  %v84_v32 = vsel %vm78_vm6, %v74_v30, %v66_v27 }
 0x104   :  { %v91_v33 = vsel %vm85_vm7, %v83_v31, %v73_v29  ;;  %v92_v34 = vsel %vm86_vm8, %v84_v32, %v74_v30 }
 0x105   :  { %v93_v35 = vadd.f32 %v91_v33, %v83_v31  ;;  %v94_v36 = vadd.f32 %v92_v34, %v84_v32 }
 0x107   :  { %v97_v39 = vadd.f32 %v95_v37, %v93_v35  ;;  %v98_v40 = vadd.f32 %v96_v38, %v94_v36 }
 0x109   :  { %v99_v41 = vmul.f32 0.0625, %v97_v39  ;;  %v100_v42 = vmul.f32 0.0625, %v98_v40 }
 0x10b   :  { %101 = vst [vmem:[#allocation5] sm:$0xff] %v99_v41  ;;  %102 = vst [vmem:[#allocation5 + $0x8] sm:$0xff] %v100_v42 }
 0x10c   :  { %155 = shalt.err (!%p152_p9)
}
 0x10d   :  { %112 = dma.vmem_to_hbm [thread:$0]  %s110_s15, 256, %s191_s1, [#allocation4]  }
 0x10e   :  { %166 = dma.done.wait [#allocation4], 256  }
 0x10f   :  { %167 = vsyncadd [#allocation4], 4294967040 }
 0x110   :  { %116 = vsyncpa [#allocation3], 1 }
 0x111   :  { %117 = vsyncpa [#allocation4], 1 }

</bundles_post_ra>
